<compile_context>
chip_gen: v6e
topology: v6e:2x2x1
jax: 0.10.0
libtpu: 0.0.40
codegen_flags: <defaults>
</compile_context>

<pallas_src>
import math

import jax
import jax.numpy as jnp
from jax.experimental import pallas as pl
from jax.experimental.pallas import tpu as pltpu

_BETA = 1e-07
# Sizing budget: 2 inputs x 2 pipeline buffers (native dtype) + ~4 (TR,N) f32
# temporaries.  The explicit scoped-VMEM limit leaves headroom on every
# generation (v5e/v6e: 128 MiB physical, v7x: 64 MiB physical).
_VMEM_SIZING_BUDGET = 32 * 1024 * 1024
_VMEM_LIMIT_BYTES = 48 * 1024 * 1024


def _round_up(x, m):
    return (x + m - 1) // m * m


def _sublane_multiple(itemsize):
    # f32 -> 8, bf16/f16 -> 16, int8/fp8 -> 32 (packed-sublane layouts).
    return max(8, 32 // max(int(itemsize), 1))


def _choose_tile_rows(rows, n, itemsize, requested=None):
    sub = _sublane_multiple(itemsize)
    if rows <= sub:
        return rows                       # single full-extent block, no overhang
    if requested is not None:
        tr = int(requested)
    else:
        # per-row bytes: 4 input buffers (native dtype) + ~4 live f32 temps.
        per_row = n * (4 * itemsize + 4 * 4)
        tr = _VMEM_SIZING_BUDGET // max(per_row, 1)
    tr = min(tr, _round_up(rows, sub))
    tr = max(sub, (int(tr) // sub) * sub)
    return tr


def _make_kernel(rows, tile_rows, n, tiles_per_core):
    # n == 1 reproduces the PyTorch NaN behaviour (unbiased std of 1 sample).
    inv_nm1 = (1.0 / (n - 1)) if n > 1 else float("nan")

    def kernel(p_ref, t_ref, o_ref):
        cp = pl.program_id(0)          # parallel (megacore) axis
        j = pl.program_id(1)           # accumulating row-tile axis

        @pl.when(j == 0)
        def _init():
            o_ref[...] = jnp.zeros_like(o_ref)

        # Upcast in VMEM (VPU slack) instead of in HBM.
        x = p_ref[...].astype(jnp.float32)          # (TR, N)
        y = t_ref[...].astype(jnp.float32)          # (TR, N)

        mean_x = jnp.mean(x, axis=-1, keepdims=True)
        mean_y = jnp.mean(y, axis=-1, keepdims=True)
        cx = x - mean_x
        cy = y - mean_y

        sxy = jnp.sum(cx * cy, axis=-1, keepdims=True)
        sxx = jnp.sum(cx * cx, axis=-1, keepdims=True)
        syy = jnp.sum(cy * cy, axis=-1, keepdims=True)

        # Bessel-corrected covariance and std product (torch.std default).
        cov = sxy * inv_nm1
        std_prod = jnp.sqrt(sxx * syy) * inv_nm1
        corr = jnp.clip(cov / (std_prod + _BETA), -1.0, 1.0)   # (TR, 1)

        # Mask rows past the true row count: covers the ragged (overhanging)
        # last block and any clamped overhang tiles on the parallel split.
        # jnp.where select keeps overhang garbage/NaN out of the accumulator.
        tile_idx = cp * tiles_per_core + j
        row_ids = (jax.lax.broadcasted_iota(jnp.int32, (tile_rows, 1), 0)
                   + tile_idx * tile_rows)
        contrib = jnp.where(row_ids < rows, 1.0 - corr, 0.0)

        # Accumulate this core's partial into its resident output block.
        o_ref[...] += jnp.sum(contrib)

    return kernel


def npearson_loss(predict, target, tile_rows=None):
    """JAX/Pallas equivalent of NPearsonLoss.forward (batch_first=True)."""
    assert predict.shape == target.shape
    n = predict.shape[-1]
    rows = int(math.prod(predict.shape[:-1])) if predict.ndim > 1 else 1

    # Keep native dtype; NO wrapper-side jnp.pad (it would re-copy both inputs
    # through HBM) — ragged blocks are handled in-kernel.
    p2 = predict.reshape(rows, n)
    t2 = target.reshape(rows, n)

    itemsize = max(jnp.dtype(p2.dtype).itemsize, jnp.dtype(t2.dtype).itemsize)
    tr = _choose_tile_rows(rows, n, itemsize, requested=tile_rows)

    num_tiles = int(pl.cdiv(rows, tr))
    # Leading parallel axis so megacore (v7x) shards row tiles across both
    # TensorCores; neutral on single-core chips.
    num_parallel = 2 if num_tiles >= 2 else 1
    tiles_per_core = int(pl.cdiv(num_tiles, num_parallel))

    def in_map(cp, j):
        tile = cp * tiles_per_core + j
        # Clamp so the (rare) overhang tile on an uneven split stays in-bounds;
        # its rows are masked out inside the kernel anyway.
        return (jnp.minimum(tile, num_tiles - 1), 0)

    kernel = _make_kernel(rows, tr, n, tiles_per_core)

    in_bytes = rows * n * (jnp.dtype(p2.dtype).itemsize
                           + jnp.dtype(t2.dtype).itemsize)
    cost = pl.CostEstimate(flops=10 * rows * n,
                           transcendentals=rows,
                           bytes_accessed=in_bytes + num_parallel * 8 * 128 * 4)

    partials = pl.pallas_call(
        kernel,
        out_shape=jax.ShapeDtypeStruct((num_parallel, 8, 128), jnp.float32),
        grid_spec=pltpu.PrefetchScalarGridSpec(
            num_scalar_prefetch=0,
            grid=(num_parallel, tiles_per_core),
            in_specs=[
                pl.BlockSpec((tr, n), in_map),
                pl.BlockSpec((tr, n), in_map),
            ],
            out_specs=pl.BlockSpec((1, 8, 128), lambda cp, j: (cp, 0, 0)),
        ),
        compiler_params=pltpu.CompilerParams(
            dimension_semantics=("parallel", "arbitrary"),
            vmem_limit_bytes=_VMEM_LIMIT_BYTES,
        ),
        cost_estimate=cost,
    )(p2, t2)

    return jnp.sum(partials[:, 0, 0]) / rows


def _reference_npearson_loss(predict, target):
    x = predict.astype(jnp.float32)
    y = target.astype(jnp.float32)
    n = x.shape[-1]
    cx = x - jnp.mean(x, axis=-1, keepdims=True)
    cy = y - jnp.mean(y, axis=-1, keepdims=True)
    cov = jnp.sum(cx * cy, axis=-1, keepdims=True) / (n - 1)
    x_std = jnp.sqrt(jnp.sum(cx * cx, axis=-1, keepdims=True) / (n - 1))
    y_std = jnp.sqrt(jnp.sum(cy * cy, axis=-1, keepdims=True) / (n - 1))
    corr = jnp.clip(cov / (x_std * y_std + _BETA), -1.0, 1.0)
    return jnp.mean(1.0 - corr)


if __name__ == "__main__":
    key = jax.random.PRNGKey(0)
    k1, k2, k3, k4, k5, k6 = jax.random.split(key, 6)

    # Case 1: (batch=2, channels=4, seq=128) — divisible rows, default tiling,
    # single tile / single core.
    p1 = jax.random.normal(k1, (2, 4, 128), dtype=jnp.float32)
    t1 = 0.5 * p1 + jax.random.normal(k2, (2, 4, 128), dtype=jnp.float32)
    l1 = npearson_loss(p1, t1)
    jax.block_until_ready(l1)
    r1 = _reference_npearson_loss(p1, t1)
    assert jnp.allclose(l1, r1, atol=1e-5, rtol=1e-5), (l1, r1)

    # Case 2: (batch=3, channels=5, seq=96) with a small explicit tile to
    # exercise the parallel partial-sum path and the ragged (un-padded)
    # overhanging last block.
    p2 = jax.random.normal(k3, (3, 5, 96), dtype=jnp.float32)
    t2 = 0.3 * p2 + jax.random.normal(k4, (3, 5, 96), dtype=jnp.float32)
    l2 = npearson_loss(p2, t2, tile_rows=8)
    jax.block_until_ready(l2)
    r2 = _reference_npearson_loss(p2, t2)
    assert jnp.allclose(l2, r2, atol=1e-5, rtol=1e-5), (l2, r2)

    # Case 3: (batch=4, channels=5, seq=160) in bf16 — native-dtype DMA,
    # 16-row sublane rounding, in-kernel f32 upcast, overhang-row masking.
    p3 = jax.random.normal(k5, (4, 5, 160), dtype=jnp.bfloat16)
    t3 = (0.7 * p3.astype(jnp.float32)
          + jax.random.normal(k6, (4, 5, 160), dtype=jnp.float32)
          ).astype(jnp.bfloat16)
    l3 = npearson_loss(p3, t3)
    jax.block_until_ready(l3)
    r3 = _reference_npearson_loss(p3, t3)
    assert jnp.allclose(l3, r3, atol=2e-5, rtol=2e-5), (l3, r3)

    print("KERNEL_OK")
</pallas_src>

<mosaic_0001>
module attributes {stable_mosaic.version = 11 : i64} {
  func.func @kernel(%arg0: i32, %arg1: i32, %arg2: memref<8x128xf32, #tpu.memory_space<vmem>>, %arg3: memref<8x128xf32, #tpu.memory_space<vmem>>, %arg4: memref<1x8x128xf32, #tpu.memory_space<vmem>>) attributes {dimension_semantics = [#tpu.dimension_semantics<parallel>, #tpu.dimension_semantics<arbitrary>], iteration_bounds = array<i64: 1, 1>, scalar_prefetch = 0 : i64, scratch_operands = 0 : i64, tpu.core_type = #tpu.core_type<tc>, window_params = [{transform_indices = @transform_0, window_bounds = array<i64: 8, 128>}, {transform_indices = @transform_1, window_bounds = array<i64: 8, 128>}, {transform_indices = @transform_2, window_bounds = array<i64: 1, 8, 128>}]} {
    %c0_i32 = arith.constant 0 : i32
    %0 = arith.cmpi eq, %arg1, %c0_i32 : i32
    %1 = arith.extui %0 : i1 to i32
    %c0_i32_0 = arith.constant 0 : i32
    %2 = arith.cmpi ne, %1, %c0_i32_0 : i32
    scf.if %2 {
      %cst_25 = arith.constant 0.000000e+00 : f32
      %59 = vector.broadcast %cst_25 : f32 to vector<1x8x128xf32>
      %c0_26 = arith.constant 0 : index
      %c0_27 = arith.constant 0 : index
      %c0_28 = arith.constant 0 : index
      %60 = vector.load %arg4[%c0_26, %c0_27, %c0_28] : memref<1x8x128xf32, #tpu.memory_space<vmem>>, vector<1x8x128xf32>
      tpu.vector_store %arg4[%c0_26, %c0_27, %c0_28], %59 {strides = array<i32>} : memref<1x8x128xf32, #tpu.memory_space<vmem>>, vector<1x8x128xf32>,
    } else {
    }
    %c0 = arith.constant 0 : index
    %c0_1 = arith.constant 0 : index
    %3 = vector.load %arg2[%c0, %c0_1] : memref<8x128xf32, #tpu.memory_space<vmem>>, vector<8x128xf32>
    %c0_2 = arith.constant 0 : index
    %c0_3 = arith.constant 0 : index
    %4 = vector.load %arg3[%c0_2, %c0_3] : memref<8x128xf32, #tpu.memory_space<vmem>>, vector<8x128xf32>
    %cst = arith.constant dense<0.000000e+00> : vector<8xf32>
    %5 = vector.multi_reduction <add>, %3, %cst [1] : vector<8x128xf32> to vector<8xf32>
    %6 = vector.shape_cast %5 : vector<8xf32> to vector<8x1xf32>
    %cst_4 = arith.constant 1.280000e+02 : f32
    %7 = vector.broadcast %cst_4 : f32 to vector<8x1xf32>
    %8 = arith.divf %6, %7 : vector<8x1xf32>
    %cst_5 = arith.constant dense<0.000000e+00> : vector<8xf32>
    %9 = vector.multi_reduction <add>, %4, %cst_5 [1] : vector<8x128xf32> to vector<8xf32>
    %10 = vector.shape_cast %9 : vector<8xf32> to vector<8x1xf32>
    %cst_6 = arith.constant 1.280000e+02 : f32
    %11 = vector.broadcast %cst_6 : f32 to vector<8x1xf32>
    %12 = arith.divf %10, %11 : vector<8x1xf32>
    %13 = vector.broadcast %8 : vector<8x1xf32> to vector<8x128xf32>
    %14 = arith.subf %3, %13 : vector<8x128xf32>
    %15 = vector.broadcast %12 : vector<8x1xf32> to vector<8x128xf32>
    %16 = arith.subf %4, %15 : vector<8x128xf32>
    %17 = arith.mulf %14, %16 : vector<8x128xf32>
    %cst_7 = arith.constant dense<0.000000e+00> : vector<8xf32>
    %18 = vector.multi_reduction <add>, %17, %cst_7 [1] : vector<8x128xf32> to vector<8xf32>
    %19 = vector.shape_cast %18 : vector<8xf32> to vector<8x1xf32>
    %20 = arith.mulf %14, %14 : vector<8x128xf32>
    %cst_8 = arith.constant dense<0.000000e+00> : vector<8xf32>
    %21 = vector.multi_reduction <add>, %20, %cst_8 [1] : vector<8x128xf32> to vector<8xf32>
    %22 = vector.shape_cast %21 : vector<8xf32> to vector<8x1xf32>
    %23 = arith.mulf %16, %16 : vector<8x128xf32>
    %cst_9 = arith.constant dense<0.000000e+00> : vector<8xf32>
    %24 = vector.multi_reduction <add>, %23, %cst_9 [1] : vector<8x128xf32> to vector<8xf32>
    %25 = vector.shape_cast %24 : vector<8xf32> to vector<8x1xf32>
    %cst_10 = arith.constant 0.00787401571 : f32
    %26 = vector.broadcast %cst_10 : f32 to vector<8x1xf32>
    %27 = arith.mulf %19, %26 : vector<8x1xf32>
    %28 = arith.mulf %22, %25 : vector<8x1xf32>
    %29 = math.sqrt %28 : vector<8x1xf32>
    %cst_11 = arith.constant 0.00787401571 : f32
    %30 = vector.broadcast %cst_11 : f32 to vector<8x1xf32>
    %31 = arith.mulf %29, %30 : vector<8x1xf32>
    %cst_12 = arith.constant 1.000000e-07 : f32
    %32 = vector.broadcast %cst_12 : f32 to vector<8x1xf32>
    %33 = arith.addf %31, %32 : vector<8x1xf32>
    %34 = arith.divf %27, %33 : vector<8x1xf32>
    %cst_13 = arith.constant -1.000000e+00 : f32
    %cst_14 = arith.constant 1.000000e+00 : f32
    %35 = vector.broadcast %cst_13 : f32 to vector<8x1xf32>
    %36 = arith.maximumf %35, %34 : vector<8x1xf32>
    %37 = vector.broadcast %cst_14 : f32 to vector<8x1xf32>
    %38 = arith.minimumf %37, %36 : vector<8x1xf32>
    %c1_i32 = arith.constant 1 : i32
    %39 = arith.muli %arg0, %c1_i32 : i32
    %40 = arith.addi %39, %arg1 : i32
    %41 = tpu.iota {dimensions = array<i32: 0>} : vector<8x1xi32>
    %c8_i32 = arith.constant 8 : i32
    %42 = arith.muli %40, %c8_i32 : i32
    %43 = vector.broadcast %42 : i32 to vector<8x1xi32>
    %44 = arith.addi %41, %43 : vector<8x1xi32>
    %c8_i32_15 = arith.constant 8 : i32
    %45 = vector.broadcast %c8_i32_15 : i32 to vector<8x1xi32>
    %46 = arith.cmpi slt, %44, %45 : vector<8x1xi32>
    %cst_16 = arith.constant 1.000000e+00 : f32
    %47 = vector.broadcast %cst_16 : f32 to vector<8x1xf32>
    %48 = arith.subf %47, %38 : vector<8x1xf32>
    %cst_17 = arith.constant 0.000000e+00 : f32
    %49 = vector.broadcast %cst_17 : f32 to vector<8x1xf32>
    %50 = arith.select %46, %48, %49 : vector<8x1xi1>, vector<8x1xf32>
    %c0_18 = arith.constant 0 : index
    %c0_19 = arith.constant 0 : index
    %c0_20 = arith.constant 0 : index
    %51 = vector.load %arg4[%c0_18, %c0_19, %c0_20] : memref<1x8x128xf32, #tpu.memory_space<vmem>>, vector<1x8x128xf32>
    %52 = vector.shape_cast %50 : vector<8x1xf32> to vector<1x8x1xf32>
    %cst_21 = arith.constant dense<0.000000e+00> : vector<1xf32>
    %53 = vector.multi_reduction <add>, %52, %cst_21 [1, 2] : vector<1x8x1xf32> to vector<1xf32>
    %54 = vector.shape_cast %53 : vector<1xf32> to vector<1x1x1xf32>
    %55 = vector.extract %54[0, 0, 0] : f32 from vector<1x1x1xf32>
    %56 = vector.broadcast %55 : f32 to vector<1x8x128xf32>
    %57 = arith.addf %51, %56 : vector<1x8x128xf32>
    %c0_22 = arith.constant 0 : index
    %c0_23 = arith.constant 0 : index
    %c0_24 = arith.constant 0 : index
    %58 = vector.load %arg4[%c0_22, %c0_23, %c0_24] : memref<1x8x128xf32, #tpu.memory_space<vmem>>, vector<1x8x128xf32>
    tpu.vector_store %arg4[%c0_22, %c0_23, %c0_24], %57 {strides = array<i32>} : memref<1x8x128xf32, #tpu.memory_space<vmem>>, vector<1x8x128xf32>,
    return
  }
  func.func @transform_0(%arg0: i32, %arg1: i32) -> (i32, i32) {
    %c1_i32 = arith.constant 1 : i32
    %0 = arith.muli %arg0, %c1_i32 : i32
    %1 = arith.addi %0, %arg1 : i32
    %c0_i32 = arith.constant 0 : i32
    %2 = arith.minsi %1, %c0_i32 : i32
    %c0_i32_0 = arith.constant 0 : i32
    %c0_i32_1 = arith.constant 0 : i32
    return %2, %c0_i32_0 : i32, i32
  }
  func.func @transform_1(%arg0: i32, %arg1: i32) -> (i32, i32) {
    %c1_i32 = arith.constant 1 : i32
    %0 = arith.muli %arg0, %c1_i32 : i32
    %1 = arith.addi %0, %arg1 : i32
    %c0_i32 = arith.constant 0 : i32
    %2 = arith.minsi %1, %c0_i32 : i32
    %c0_i32_0 = arith.constant 0 : i32
    %c0_i32_1 = arith.constant 0 : i32
    return %2, %c0_i32_0 : i32, i32
  }
  func.func @transform_2(%arg0: i32, %arg1: i32) -> (i32, i32, i32) {
    %c0_i32 = arith.constant 0 : i32
    %c0_i32_0 = arith.constant 0 : i32
    %c0_i32_1 = arith.constant 0 : i32
    return %arg0, %c0_i32, %c0_i32_0 : i32, i32, i32
  }
}

</mosaic_0001>

<bundles_post_ra>
// kernel: tpu_custom_call.1
= control target key start
LH: loop header
LB: loop body
LE: loop exit
PB: predicated region body
PF: predicated region fallthrough
CT: control target
= control target key end

     0   :  { %7 = vsyncpa [#allocation3], 0  ;;  %s240_s0 = inlined_call_operand.hbm [shape: f32[8,128], index: 0, kind: input, shape index: {}]   ;;  %s241_s1 = inlined_call_operand.hbm [shape: f32[8,128], index: 1, kind: input, shape index: {}]   ;;  %s242_s2 = inlined_call_operand.hbm [shape: f32[1,8,128], index: 2, kind: output, shape index: {}]  }
   0x1   :  { %8 = vsyncpa [#allocation6], 0 }
   0x2   :  { %9 = vsyncpa [#allocation4], 0  ;;  %s213_s9 = smov [#allocation2]   ;;  %s214_s11 = smov [#allocation5]  }
   0x3   :  { %s21_s10 = sshll.u32 %s213_s9, 4  ;;  %s36_s12 = sshll.u32 %s214_s11, 4  ;;  %s22_s10 = int_to_ptr.vmem [resolvable:$true] %s21_s10  ;;  %s37_s12 = int_to_ptr.vmem [resolvable:$true] %s36_s12 }
   0x4   :  { %s155_s13 = scalar_lea.vmem %s22_s10, 128  ;;  %p160_p1 = scmp.lt.s32.totalorder %s22_s10, %s22_s10 }
   0x5   :  { %p156_p0 = scmp.ne.s32.totalorder %s22_s10, %s155_s13  ;;  %p161_p2 = scmp.lt.s32.totalorder %s155_s13, %s155_s13 }
   0x7   :  { %p162_p3 = por %p161_p2, %p160_p1 }
   0x9   :  { %p163_p4 = pnand %p162_p3, %p156_p0 }
   0xb   :  { %166 = shalt.err (!%p163_p4)
}
   0xc   :  { %24 = dma.hbm_to_vmem [thread:$0]  %s240_s0, 128, %s22_s10, [#allocation3]  }
   0xd   :  { %s175_s16 = scalar_lea.vmem %s37_s12, 128  ;;  %p180_p6 = scmp.lt.s32.totalorder %s37_s12, %s37_s12 }
   0xe   :  { %p176_p5 = scmp.ne.s32.totalorder %s37_s12, %s175_s16  ;;  %p181_p7 = scmp.lt.s32.totalorder %s175_s16, %s175_s16 }
  0x10   :  { %p182_p8 = por %p181_p7, %p180_p6 }
  0x12   :  { %p183_p9 = pnand %p182_p8, %p176_p5 }
  0x14   :  { %186 = shalt.err (!%p183_p9)
}
  0x15   :  { %39 = dma.hbm_to_vmem [thread:$0]  %s241_s1, 128, %s37_s12, [#allocation6]  }
  0x16   :  { %207 = dma.done.wait [#allocation3], 128  }
  0x17   :  { %208 = vsyncadd [#allocation3], 4294967168 }
  0x18   :  { %209 = dma.done.wait [#allocation6], 128  }
  0x19   :  { %210 = vsyncadd [#allocation6], 4294967168  ;;  %v57_v0 = vld [vmem:[#allocation2] sm:$0xff]  ;;  %v58_v1 = vld [vmem:[#allocation5] sm:$0xff]  ;;  %vm102_vm2 = vcmask 7168   ;;  %s215_s0 = smov [#allocation7]  }
  0x1a   :  { %59 = vadd.xlane.f32.xlu0 %v57_v0  ;;  %s122_s1 = sshll.u32 %s215_s0, 4  ;;  %s123_s1 = int_to_ptr.vmem [resolvable:$true] %s122_s1 }
  0x1b   :  { %s187_s20 = scalar_lea.vmem %s123_s1, 128  ;;  %p192_p11 = scmp.lt.s32.totalorder %s123_s1, %s123_s1 }
  0x1c   :  { %p188_p10 = scmp.ne.s32.totalorder %s123_s1, %s187_s20  ;;  %p193_p12 = scmp.lt.s32.totalorder %s187_s20, %s187_s20 }
  0x1e   :  { %63 = vadd.xlane.f32.xlu0 %v58_v1  ;;  %p194_p13 = por %p193_p12, %p192_p11 }
  0x20   :  { %p195_p0 = pnand %p194_p13, %p188_p10 }
  0xa3   :  { %v60_v2 = vpop.xlane.xlu0 %59 }
  0xa4   :  { %v62_v3 = vmul.f32 0.0078125, %v60_v2 }
  0xa6   :  { %v66_v4 = vsub.f32 %v57_v0, %v62_v3 }
  0xa7   :  { %v64_v5 = vpop.xlane.xlu0 %63 }
  0xa8   :  { %v65_v6 = vmul.f32 0.0078125, %v64_v5  ;;  %v71_v7 = vmul.f32 %v66_v4, %v66_v4 }
  0xaa   :  { %v67_v8 = vsub.f32 %v58_v1, %v65_v6  ;;  %72 = vadd.xlane.f32.xlu1 %v71_v7 }
  0xac   :  { %v74_v9 = vmul.f32 %v67_v8, %v67_v8  ;;  %v68_v10 = vmul.f32 %v67_v8, %v66_v4 }
  0xae   :  { %75 = vadd.xlane.f32.xlu1 %v74_v9  ;;  %69 = vadd.xlane.f32.xlu0 %v68_v10 }
 0x133   :  { %v73_v11 = vpop.xlane.xlu1 %72 }
 0x137   :  { %v76_v12 = vpop.xlane.xlu1 %75  ;;  %v70_v21 = vpop.xlane.xlu0 %69 }
 0x138   :  { %v78_v13 = vmul.f32 %v76_v12, %v73_v11  ;;  %v77_v22 = vmul.f32 0.007874016, %v70_v21 }
 0x13a   :  { %143 = vrsqrt.f32 %v78_v13  ;;  %vm81_vm0 = vcmp.eq.f32.partialorder %v78_v13, inf  ;;  %v84_v16 = vand.u32 2147483648, %v78_v13  ;;  %vm83_vm1 = vcmp.eq.f32.partialorder %v78_v13, 0.0 }
 0x147   :  { %v144_v14 = vpop.eup %143 }
 0x148   :  { %v80_v15 = vmul.f32 %v144_v14, %v78_v13 }
 0x14a   :  { %v82_v17 = vsel %vm81_vm0, %v78_v13, %v80_v15 }
 0x14b   :  { %v85_v18 = vsel %vm83_vm1, %v84_v16, %v82_v17 }
 0x14c   :  { %v86_v19 = vmul.f32 0.007874016, %v85_v18 }
 0x14e   :  { %v87_v20 = vadd.f32 1e-07, %v86_v19 }
 0x150   :  { %145 = vrcp.f32 %v87_v20 }
 0x15d   :  { %v146_v23 = vpop.eup %145 }
 0x15e   :  { %v89_v24 = vmul.f32 %v146_v23, %v77_v22 }
 0x160   :  { %v136_v25 = vclamps-f32 %v89_v24, 1.0 }
 0x162   :  { %v99_v26 = vsub.f32 1.0, %v136_v25 }
 0x164   :  { %v103_v27 = vsel %vm102_vm2, %v99_v26, 0.0 }
 0x165   :  { %104 = vadd.xlane.f32.xlu1 %v103_v27 }
 0x1ee   :  { %v105_v28 = vpop.xlane.xlu1 %104 }
 0x1ef   :  { %v106_v29 = vrot.slane %v105_v28, 4 }
 0x1f1   :  { %v107_v30 = vadd.f32 %v106_v29, %v105_v28 }
 0x1f3   :  { %v108_v31 = vrot.slane %v107_v30, 2 }
 0x1f5   :  { %v109_v32 = vadd.f32 %v108_v31, %v107_v30 }
 0x1f7   :  { %v110_v33 = vrot.slane %v109_v32, 1 }
 0x1f9   :  { %v111_v34 = vadd.f32 %v110_v33, %v109_v32 }
 0x1fb   :  { %137 = vpush %v111_v34 }
 0x22c   :  { %s138_s19 = spop %137 }
 0x22d   :  { %v113_v35 = vstv %s138_s19 }
 0x22e   :  { %115 = vst [vmem:[#allocation7] sm:$0xff] %v113_v35 }
 0x22f   :  { %198 = shalt.err (!%p195_p0)
}
 0x230   :  { %125 = dma.vmem_to_hbm [thread:$0]  %s123_s1, 128, %s242_s2, [#allocation4]  }
 0x231   :  { %211 = dma.done.wait [#allocation4], 128  }
 0x232   :  { %212 = vsyncadd [#allocation4], 4294967168 }
 0x233   :  { %129 = vsyncpa [#allocation3], 1 }
 0x234   :  { %130 = vsyncpa [#allocation6], 1 }
 0x235   :  { %131 = vsyncpa [#allocation4], 1 }

</bundles_post_ra>
